<compile_context>
chip_gen: v7x
topology: tpu7x:2x2x1
jax: 0.10.0
libtpu: 0.0.40
codegen_flags: <defaults>
</compile_context>

<pallas_src>
import functools

import jax
import jax.numpy as jnp
import numpy as np
from jax.experimental import pallas as pl
from jax.experimental.pallas import tpu as pltpu

# ---------------- model hyper-parameters (small, synthetic) ----------------
ARGS = dict(
    embed_num=100,          # unused by forward (no embedding lookup in forward)
    embed_dim=32,           # D
    class_num=4,            # C
    kernel_num=8,           # Co
    kernel_sizes=(3, 4, 5),  # Ks
    dropout=0.5,            # identity at inference
    static=False,
)
N = 2          # batch
L = 16         # sequence length
LANE = 128     # padded output-lane width (lane-dense stores)


# ------------------------------ Pallas kernel -------------------------------
def cnn_text_kernel(Ks, Co, x_ref, wconv_ref, wfc_ref, bias_ref, out_ref):
    """Fused im2col conv + masked max-pool-over-time + bias/ReLU + FC + sigmoid.

    x_ref     : (nb, L, D)        f32 input embeddings (batch tile)
    wconv_ref : (Kmax*D, F)       bf16 im2col conv weight, F = len(Ks)*Co.
                                  Column group g (kernel size Ks[g]) holds tap k
                                  at rows [k*D:(k+1)*D]; zero rows for k >= Ks[g].
    wfc_ref   : (F, LANE)         f32 fc weight, zero-padded to 128 output lanes
    bias_ref  : (2, LANE)         f32: row 0 = conv biases (F real lanes),
                                       row 1 = fc bias     (C real lanes)
    out_ref   : (1, nb, LANE)     f32 sigmoid(logits), lane-dense
    """
    nb, seq_len, d = x_ref.shape
    nk = len(Ks)
    kmax = max(Ks)
    f = nk * Co

    # x is read from HBM exactly once as f32; dtype conversion happens in-vreg.
    x = x_ref[...]                                            # (nb, L, D) f32

    # --- im2col: windows of Kmax consecutive time steps concatenated on lanes.
    # Zero-pad time by Kmax-1 so every window is a simple static slice; trailing
    # windows are only partial sums and are masked out before the max-pool.
    xpad = jnp.concatenate(
        [x, jnp.zeros((nb, kmax - 1, d), x.dtype)], axis=1)   # (nb, L+Kmax-1, D)
    xi = jnp.concatenate(
        [xpad[:, k:k + seq_len, :] for k in range(kmax)],
        axis=-1)                                              # (nb, L, Kmax*D) f32
    xi = xi.astype(jnp.bfloat16)                              # MXU operands in bf16

    # --- single flat 2-D GEMM (M = nb*L rows, contraction Kmax*D, f32 accum)
    y = jnp.dot(xi.reshape(nb * seq_len, kmax * d), wconv_ref[...],
                preferred_element_type=jnp.float32)           # (nb*L, F)
    y = y.reshape(nb, seq_len, f)

    # --- masked max-pool over time: kernel size Ks[g] is valid for t < L-Ks[g]+1
    t_idx = jax.lax.broadcasted_iota(jnp.int32, (seq_len, f), 0)
    c_idx = jax.lax.broadcasted_iota(jnp.int32, (seq_len, f), 1)
    valid = jnp.zeros((seq_len, f), jnp.bool_)
    for g, K in enumerate(Ks):
        grp = (c_idx >= g * Co) & (c_idx < (g + 1) * Co)
        valid = valid | (grp & (t_idx < seq_len - K + 1))
    neg = jnp.float32(-1e30)
    pooled = jnp.max(jnp.where(valid[None], y, neg), axis=1)  # (nb, F)

    # conv bias + ReLU hoisted past the time max (ReLU monotone, bias time-const)
    biases = bias_ref[...]                                    # (2, LANE)
    pooled = jnp.maximum(pooled + biases[0:1, 0:f], 0.0)      # (nb, F) f32

    # TODO(synk): dropout is identity at inference (eval mode); train-time mask not implemented.

    # --- FC + sigmoid; f32 operands (tiny GEMM), 128-lane-dense output store.
    logits = jnp.dot(pooled, wfc_ref[...],
                     preferred_element_type=jnp.float32) + biases[1:2, :]
    out_ref[0] = jax.nn.sigmoid(logits)                       # (nb, LANE)


# ------------------------------ host wrapper ---------------------------------
def cnn_text_forward(x, wconv_bf16, wfc_pad, bias_pack, Ks, Co, n_classes,
                     *, batch_block=256):
    """x: (N, L, D) f32.  wconv_bf16: (Kmax*D, F) bf16 im2col weight,
    wfc_pad: (F, 128) f32, bias_pack: (2, 128) f32.  Returns (N, n_classes) f32."""
    n, l, d = x.shape
    kmax = max(Ks)
    f = len(Ks) * Co

    # At least 2 grid steps when n >= 2 (feeds both v7x TensorCores via the
    # "parallel" axis); capped by batch_block so a few fat steps amortize the
    # per-step overhead while the per-step VMEM footprint stays comfortable on
    # every generation (v5e/v6e: can raise batch_block to 512-1024; v7x: keep
    # the f32/bf16 intermediates well under its 64 MiB VMEM).
    nb = min(batch_block, max(1, pl.cdiv(n, 2)))
    g = pl.cdiv(n, nb)

    kernel = functools.partial(cnn_text_kernel, Ks, Co)
    out = pl.pallas_call(
        kernel,
        # Output shaped (grid, nb, 128): block == full array on the last two
        # dims for ANY nb, and 128 lanes -> unmasked stores.
        out_shape=jax.ShapeDtypeStruct((g, nb, LANE), jnp.float32),
        grid_spec=pltpu.PrefetchScalarGridSpec(
            num_scalar_prefetch=0,
            grid=(g,),
            in_specs=[
                pl.BlockSpec((nb, l, d), lambda i: (i, 0, 0)),    # x (f32), batch-tiled
                pl.BlockSpec((kmax * d, f), lambda i: (0, 0)),    # im2col conv weight
                pl.BlockSpec((f, LANE), lambda i: (0, 0)),        # padded fc weight
                pl.BlockSpec((2, LANE), lambda i: (0, 0)),        # packed biases
            ],
            out_specs=pl.BlockSpec((1, nb, LANE), lambda i: (i, 0, 0)),
        ),
        compiler_params=pltpu.CompilerParams(
            dimension_semantics=("parallel",)),
    )(x, wconv_bf16, wfc_pad, bias_pack)

    # Trailing padded rows (if g*nb > n) computed on garbage inputs and discarded
    # here; rows are independent, so this is benign.
    return out.reshape(g * nb, LANE)[:n, :n_classes]


# ------------------------- pure-JAX reference check -------------------------
def reference_forward(x, conv_params, fc_w, fc_b, Ks, Co, conv_dtype=jnp.float32):
    """PyTorch-faithful forward. conv_dtype controls only the conv matmul operand
    dtype (f32 accumulation), mirroring the kernel's bf16 MXU path when bf16."""
    feats = []
    for (w_kdc, b), K in zip(conv_params, Ks):
        l_out = x.shape[1] - K + 1
        acc = jnp.zeros((x.shape[0], l_out, Co), jnp.float32)
        for k in range(K):
            acc = acc + jnp.einsum('nld,dc->nlc',
                                   x[:, k:k + l_out, :].astype(conv_dtype),
                                   w_kdc[k].astype(conv_dtype),
                                   preferred_element_type=jnp.float32)
        # relu(max_t(acc)+b) == max_t(relu(acc+b)): ReLU monotone, bias time-constant.
        feats.append(jnp.maximum(jnp.max(acc, axis=1) + b, 0.0))
    feat = jnp.concatenate(feats, axis=1)
    logits = feat @ fc_w + fc_b                     # f32 FC, like the kernel
    return jax.nn.sigmoid(logits)


# ---------------------------------- main -------------------------------------
if __name__ == "__main__":
    D = ARGS['embed_dim']
    C = ARGS['class_num']
    Co = ARGS['kernel_num']
    Ks = ARGS['kernel_sizes']
    nK = len(Ks)
    Kmax = max(Ks)
    F = nK * Co

    key = jax.random.PRNGKey(0)
    keys = jax.random.split(key, 2 * nK + 3)

    # input "embedded sentence" (the module's forward receives dense x)
    x = jax.random.normal(keys[0], (N, L, D), dtype=jnp.float32)

    # deterministic parameter init (PyTorch-style uniform ranges)
    conv_params = []
    for i, K in enumerate(Ks):
        fan_in = 1 * K * D
        bound = 1.0 / np.sqrt(fan_in)
        w_torch = jax.random.uniform(keys[1 + 2 * i], (Co, 1, K, D),
                                     minval=-bound, maxval=bound)   # Conv2d weight
        b = jax.random.uniform(keys[2 + 2 * i], (Co,),
                               minval=-bound, maxval=bound)
        w_kdc = jnp.transpose(w_torch[:, 0, :, :], (1, 2, 0))        # (K, D, Co)
        conv_params.append((w_kdc.astype(jnp.float32), b.astype(jnp.float32)))

    bound = 1.0 / np.sqrt(F)
    fc_w_torch = jax.random.uniform(keys[-2], (C, F), minval=-bound, maxval=bound)
    fc_b = jax.random.uniform(keys[-1], (C,), minval=-bound, maxval=bound)
    fc_w = jnp.transpose(fc_w_torch).astype(jnp.float32)             # (F, C)

    # im2col conv weight (Kmax*D, F): tap k of kernel-size group g at rows
    # [k*D:(k+1)*D], cols [g*Co:(g+1)*Co]; zero rows for k >= Ks[g].
    wconv_np = np.zeros((Kmax * D, F), np.float32)
    for g_i, (K, (w_kdc, _)) in enumerate(zip(Ks, conv_params)):
        w_np = np.asarray(w_kdc)
        for k in range(K):
            wconv_np[k * D:(k + 1) * D, g_i * Co:(g_i + 1) * Co] = w_np[k]
    wconv_bf16 = jnp.asarray(wconv_np, jnp.bfloat16)

    # fc weight zero-padded to 128 output lanes (lane-dense final stores)
    wfc_pad = jnp.zeros((F, LANE), jnp.float32).at[:, :C].set(fc_w)

    # packed biases: row 0 = conv biases (F lanes), row 1 = fc bias (C lanes)
    bias_pack = jnp.zeros((2, LANE), jnp.float32)
    bias_pack = bias_pack.at[0, :F].set(
        jnp.concatenate([b for _, b in conv_params]))
    bias_pack = bias_pack.at[1, :C].set(fc_b)

    out = cnn_text_forward(x, wconv_bf16, wfc_pad, bias_pack, Ks, Co, C)
    out = jax.block_until_ready(out)
    assert out.shape == (N, C)

    # Tight check against a reference using the same bf16-operand / f32-accum
    # conv matmul path as the kernel (FC is f32 in both).
    ref_bf16 = reference_forward(x, conv_params, fc_w, fc_b, Ks, Co,
                                 conv_dtype=jnp.bfloat16)
    assert np.allclose(np.asarray(out), np.asarray(ref_bf16), atol=2e-3, rtol=0.0)

    # Loose check against the pure-f32, PyTorch-faithful forward (tolerance
    # budget comes only from the deliberate bf16 conv-matmul operands).
    ref_f32 = reference_forward(x, conv_params, fc_w, fc_b, Ks, Co,
                                conv_dtype=jnp.float32)
    assert np.allclose(np.asarray(out), np.asarray(ref_f32), atol=5e-2, rtol=0.0)

    print("KERNEL_OK")
</pallas_src>

<mosaic_0001>
module attributes {stable_mosaic.version = 11 : i64} {
  func.func @cnn_text_kernel(%arg0: i32, %arg1: memref<1x16x32xf32, #tpu.memory_space<vmem>>, %arg2: memref<160x24xbf16, #tpu.memory_space<vmem>>, %arg3: memref<24x128xf32, #tpu.memory_space<vmem>>, %arg4: memref<2x128xf32, #tpu.memory_space<vmem>>, %arg5: memref<1x1x128xf32, #tpu.memory_space<vmem>>) attributes {dimension_semantics = [#tpu.dimension_semantics<parallel>], iteration_bounds = array<i64: 2>, scalar_prefetch = 0 : i64, scratch_operands = 0 : i64, tpu.core_type = #tpu.core_type<tc>, window_params = [{transform_indices = @transform_0, window_bounds = array<i64: 1, 16, 32>}, {pipeline_mode = #tpu.pipeline_mode<synchronous>, transform_indices = @transform_1, window_bounds = array<i64: 160, 24>}, {pipeline_mode = #tpu.pipeline_mode<synchronous>, transform_indices = @transform_2, window_bounds = array<i64: 24, 128>}, {pipeline_mode = #tpu.pipeline_mode<synchronous>, transform_indices = @transform_3, window_bounds = array<i64: 2, 128>}, {transform_indices = @transform_4, window_bounds = array<i64: 1, 1, 128>}]} {
    %c0 = arith.constant 0 : index
    %c0_0 = arith.constant 0 : index
    %c0_1 = arith.constant 0 : index
    %0 = vector.load %arg1[%c0, %c0_0, %c0_1] : memref<1x16x32xf32, #tpu.memory_space<vmem>>, vector<1x16x32xf32>
    %cst = arith.constant 0.000000e+00 : f32
    %1 = vector.broadcast %cst : f32 to vector<1x4x32xf32>
    %2 = tpu.concatenate %0, %1 in 1 : vector<1x16x32xf32>, vector<1x4x32xf32> -> vector<1x20x32xf32>
    %3 = vector.extract_strided_slice %2 {offsets = [0, 0, 0], sizes = [1, 16, 32], strides = [1, 1, 1]} : vector<1x20x32xf32> to vector<1x16x32xf32>
    %4 = vector.extract_strided_slice %2 {offsets = [0, 1, 0], sizes = [1, 16, 32], strides = [1, 1, 1]} : vector<1x20x32xf32> to vector<1x16x32xf32>
    %5 = vector.extract_strided_slice %2 {offsets = [0, 2, 0], sizes = [1, 16, 32], strides = [1, 1, 1]} : vector<1x20x32xf32> to vector<1x16x32xf32>
    %6 = vector.extract_strided_slice %2 {offsets = [0, 3, 0], sizes = [1, 16, 32], strides = [1, 1, 1]} : vector<1x20x32xf32> to vector<1x16x32xf32>
    %7 = vector.extract_strided_slice %2 {offsets = [0, 4, 0], sizes = [1, 16, 32], strides = [1, 1, 1]} : vector<1x20x32xf32> to vector<1x16x32xf32>
    %8 = tpu.concatenate %3, %4, %5, %6, %7 in 2 : vector<1x16x32xf32>, vector<1x16x32xf32>, vector<1x16x32xf32>, vector<1x16x32xf32>, vector<1x16x32xf32> -> vector<1x16x160xf32>
    %9 = arith.truncf %8 : vector<1x16x160xf32> to vector<1x16x160xbf16>
    %10 = vector.shape_cast %9 : vector<1x16x160xbf16> to vector<16x160xbf16>
    %c0_2 = arith.constant 0 : index
    %c0_3 = arith.constant 0 : index
    %11 = vector.load %arg2[%c0_2, %c0_3] : memref<160x24xbf16, #tpu.memory_space<vmem>>, vector<160x24xbf16>
    %cst_4 = arith.constant dense<0.000000e+00> : vector<16x24xf32>
    %12 = tpu.matmul %10, %11, %cst_4 {dimension_numbers = #tpu.dot_dimension_numbers<[1], [0], [0], [1], [0, 0, 1, 1], [], []>} : vector<16x160xbf16>, vector<160x24xbf16>, vector<16x24xf32> -> vector<16x24xf32>
    %13 = vector.shape_cast %12 : vector<16x24xf32> to vector<1x16x24xf32>
    %14 = tpu.iota {dimensions = array<i32: 0>} : vector<16x24xi32>
    %15 = tpu.iota {dimensions = array<i32: 1>} : vector<16x24xi32>
    %false = arith.constant false
    %16 = vector.broadcast %false : i1 to vector<16x24xi1>
    %c0_i32 = arith.constant 0 : i32
    %17 = vector.broadcast %c0_i32 : i32 to vector<16x24xi32>
    %18 = arith.cmpi sge, %15, %17 : vector<16x24xi32>
    %c8_i32 = arith.constant 8 : i32
    %19 = vector.broadcast %c8_i32 : i32 to vector<16x24xi32>
    %20 = arith.cmpi slt, %15, %19 : vector<16x24xi32>
    %21 = arith.andi %18, %20 : vector<16x24xi1>
    %c14_i32 = arith.constant 14 : i32
    %22 = vector.broadcast %c14_i32 : i32 to vector<16x24xi32>
    %23 = arith.cmpi slt, %14, %22 : vector<16x24xi32>
    %24 = arith.andi %21, %23 : vector<16x24xi1>
    %25 = arith.ori %16, %24 : vector<16x24xi1>
    %c8_i32_5 = arith.constant 8 : i32
    %26 = vector.broadcast %c8_i32_5 : i32 to vector<16x24xi32>
    %27 = arith.cmpi sge, %15, %26 : vector<16x24xi32>
    %c16_i32 = arith.constant 16 : i32
    %28 = vector.broadcast %c16_i32 : i32 to vector<16x24xi32>
    %29 = arith.cmpi slt, %15, %28 : vector<16x24xi32>
    %30 = arith.andi %27, %29 : vector<16x24xi1>
    %c13_i32 = arith.constant 13 : i32
    %31 = vector.broadcast %c13_i32 : i32 to vector<16x24xi32>
    %32 = arith.cmpi slt, %14, %31 : vector<16x24xi32>
    %33 = arith.andi %30, %32 : vector<16x24xi1>
    %34 = arith.ori %25, %33 : vector<16x24xi1>
    %c16_i32_6 = arith.constant 16 : i32
    %35 = vector.broadcast %c16_i32_6 : i32 to vector<16x24xi32>
    %36 = arith.cmpi sge, %15, %35 : vector<16x24xi32>
    %c24_i32 = arith.constant 24 : i32
    %37 = vector.broadcast %c24_i32 : i32 to vector<16x24xi32>
    %38 = arith.cmpi slt, %15, %37 : vector<16x24xi32>
    %39 = arith.andi %36, %38 : vector<16x24xi1>
    %c12_i32 = arith.constant 12 : i32
    %40 = vector.broadcast %c12_i32 : i32 to vector<16x24xi32>
    %41 = arith.cmpi slt, %14, %40 : vector<16x24xi32>
    %42 = arith.andi %39, %41 : vector<16x24xi1>
    %43 = arith.ori %34, %42 : vector<16x24xi1>
    %44 = vector.shape_cast %43 : vector<16x24xi1> to vector<1x16x24xi1>
    %cst_7 = arith.constant -1.000000e+30 : f32
    %45 = vector.broadcast %cst_7 : f32 to vector<1x16x24xf32>
    %46 = arith.select %44, %13, %45 : vector<1x16x24xi1>, vector<1x16x24xf32>
    %cst_8 = arith.constant dense<0xFF800000> : vector<1x24xf32>
    %47 = vector.multi_reduction <maximumf>, %46, %cst_8 [1] : vector<1x16x24xf32> to vector<1x24xf32>
    %c0_9 = arith.constant 0 : index
    %c0_10 = arith.constant 0 : index
    %48 = vector.load %arg4[%c0_9, %c0_10] : memref<2x128xf32, #tpu.memory_space<vmem>>, vector<2x128xf32>
    %49 = vector.extract_strided_slice %48 {offsets = [0, 0], sizes = [1, 24], strides = [1, 1]} : vector<2x128xf32> to vector<1x24xf32>
    %50 = arith.addf %47, %49 : vector<1x24xf32>
    %cst_11 = arith.constant 0.000000e+00 : f32
    %51 = vector.broadcast %cst_11 : f32 to vector<1x24xf32>
    %52 = arith.maximumf %50, %51 : vector<1x24xf32>
    %c0_12 = arith.constant 0 : index
    %c0_13 = arith.constant 0 : index
    %53 = vector.load %arg3[%c0_12, %c0_13] : memref<24x128xf32, #tpu.memory_space<vmem>>, vector<24x128xf32>
    %cst_14 = arith.constant dense<0.000000e+00> : vector<1x128xf32>
    %54 = tpu.matmul %52, %53, %cst_14 {dimension_numbers = #tpu.dot_dimension_numbers<[1], [0], [0], [1], [0, 0, 1, 1], [], []>} : vector<1x24xf32>, vector<24x128xf32>, vector<1x128xf32> -> vector<1x128xf32>
    %55 = vector.extract_strided_slice %48 {offsets = [1, 0], sizes = [1, 128], strides = [1, 1]} : vector<2x128xf32> to vector<1x128xf32>
    %56 = arith.addf %54, %55 : vector<1x128xf32>
    %57 = arith.negf %56 : vector<1x128xf32>
    %58 = math.exp %57 : vector<1x128xf32>
    %cst_15 = arith.constant 1.000000e+00 : f32
    %59 = vector.broadcast %cst_15 : f32 to vector<1x128xf32>
    %60 = arith.addf %59, %58 : vector<1x128xf32>
    %61 = arith.divf %59, %60 : vector<1x128xf32>
    %c0_16 = arith.constant 0 : index
    %c0_17 = arith.constant 0 : index
    %c0_18 = arith.constant 0 : index
    %62 = vector.load %arg5[%c0_16, %c0_17, %c0_18] : memref<1x1x128xf32, #tpu.memory_space<vmem>>, vector<1x1x128xf32>
    %63 = vector.shape_cast %62 : vector<1x1x128xf32> to vector<1x128xf32>
    %64 = vector.shape_cast %61 : vector<1x128xf32> to vector<1x1x128xf32>
    tpu.vector_store %arg5[%c0_16, %c0_17, %c0_18], %64 {strides = array<i32>} : memref<1x1x128xf32, #tpu.memory_space<vmem>>, vector<1x1x128xf32>,
    return
  }
  func.func @transform_0(%arg0: i32) -> (i32, i32, i32) {
    %c0_i32 = arith.constant 0 : i32
    %c0_i32_0 = arith.constant 0 : i32
    %c0_i32_1 = arith.constant 0 : i32
    return %arg0, %c0_i32, %c0_i32_0 : i32, i32, i32
  }
  func.func @transform_1(%arg0: i32) -> (i32, i32) {
    %c0_i32 = arith.constant 0 : i32
    %c0_i32_0 = arith.constant 0 : i32
    %c0_i32_1 = arith.constant 0 : i32
    return %c0_i32, %c0_i32_0 : i32, i32
  }
  func.func @transform_2(%arg0: i32) -> (i32, i32) {
    %c0_i32 = arith.constant 0 : i32
    %c0_i32_0 = arith.constant 0 : i32
    %c0_i32_1 = arith.constant 0 : i32
    return %c0_i32, %c0_i32_0 : i32, i32
  }
  func.func @transform_3(%arg0: i32) -> (i32, i32) {
    %c0_i32 = arith.constant 0 : i32
    %c0_i32_0 = arith.constant 0 : i32
    %c0_i32_1 = arith.constant 0 : i32
    return %c0_i32, %c0_i32_0 : i32, i32
  }
  func.func @transform_4(%arg0: i32) -> (i32, i32, i32) {
    %c0_i32 = arith.constant 0 : i32
    %c0_i32_0 = arith.constant 0 : i32
    %c0_i32_1 = arith.constant 0 : i32
    return %arg0, %c0_i32, %c0_i32_0 : i32, i32, i32
  }
}

</mosaic_0001>

<bundles_post_ra>
// kernel: tpu_custom_call.1
= control target key start
LH: loop header
LB: loop body
LE: loop exit
PB: predicated region body
PF: predicated region fallthrough
CT: control target
= control target key end

     0   :  { %9 = vsyncpa [#allocation3], 0  ;;  %s974_s0 = inlined_call_operand.vmem [shape: f32[2,16,32], index: 0, kind: input, shape index: {}]   ;;  %s975_s1 = inlined_call_operand.vmem [shape: bf16[160,24], index: 1, kind: input, shape index: {}]   ;;  %s976_s2 = inlined_call_operand.vmem [shape: f32[24,128], index: 2, kind: input, shape index: {}]   ;;  %s977_s3 = inlined_call_operand.vmem [shape: f32[2,128], index: 3, kind: input, shape index: {}]   ;;  %s978_s4 = inlined_call_operand.hbm [shape: f32[2,1,128], index: 4, kind: output, shape index: {}]  }
   0x1   :  { %11 = vsyncpa [#allocation3 + $0x1], 0  ;;  %s790_s15 = smov 0   ;;  %s792_s16 = smov 0  }
   0x2   :  { %s794_s17 = smov 0   ;;  %s796_s18 = smov 0  }
   0x3 LB: > { %s811_s19 = sadd.s32 4294967295, %s755_s18   ;;  %s579_s20 = sadd.s32 4294967294, %s755_s18   ;;  %s755_s18 = sphi %s796_s18, %s984_s18   ;;  %s751_s17 = sphi %s794_s17, %s983_s17   ;;  %s747_s16 = sphi %s792_s16, %s982_s16   ;;  %s743_s15 = sphi %s790_s15, %s981_s15  }
   0x4   : > { %s815_s21 = sadd.s32 1, %s755_s18   ;;  %s113_s22 = sadd.s32 1, %s751_s17 }
   0x5   : > { %s110_s23 = ssub.s32 %s755_s18, %s815_s21  ;;  %p123_p0 = scmp.ne.s32.totalorder %s751_s17, %s747_s16 }
   0x6   : > { %p111_p1 = scmp.eq.s32.totalorder %s110_s23, 0  ;;  %p124_p2 = scmp.eq.s32.totalorder %s811_s19, 1 }
   0x7   : > { %p129_p3 = scmp.ne.s32.totalorder %s747_s16, %s743_s15  ;;  %p130_p4 = scmp.eq.s32.totalorder %s579_s20, 1 }
   0x8   : > { %s826_s24 = scalar_select %p111_p1, %s751_s17, %s113_s22  }
   0x9   : > { %p828_p5 = por %p124_p2, %p123_p0  ;;  %p832_p6 = por %p130_p4, %p129_p3 }
   0xa   : > { %p582_p7 = scmp.ge.s32.totalorder %s755_s18, 1  ;;  %p165_p8 = scmp.lt.s32.totalorder %s755_s18, 3 }
   0xc   : > { %p166_p9 = pnand %p582_p7, %p165_p8 }
   0xd   : > { %p190_p10 = scmp.lt.s32.totalorder (!%p166_p9), %s811_s19, 1  ;;  %v757_v0 = vmov (!%p166_p9), 0   ;;  %v679_v1 = vld [vmem:[%s975_s1] sm:$0xff] (!%p166_p9)   ;;  %vm201_vm0 = vcmask (!%p166_p9), 1046528   ;;  %vm213_vm1 = vcmask (!%p166_p9), 1045504   ;;  %v680_v2 = vld [vmem:[%s975_s1 + $0x8] sm:$0xff] (!%p166_p9)   ;;  %v380_v59 = vlaneseq (!%p166_p9) }
   0xe   : > { %169 = sbr.rel (%p166_p9) target bundleno = 644 (0x284), region = 36  ;;  %339 = vmatprep.subr.bf16.mxu0 (!%p166_p9), %v757_v0  ;;  %v758_v3 = vmov (!%p166_p9), 0.0   ;;  %vm225_vm2 = vcmask (!%p166_p9), 1044480   ;;  %v681_v15 = vld [vmem:[%s975_s1 + $0x10] sm:$0xff] (!%p166_p9)   ;;  %vm237_vm3 = vcmask (!%p166_p9), 1043456   ;;  %s759_s12 = smov (!%p166_p9), 32  }
   0xf   : > { %340 = vmatpush1.bf16.msra.mxu0 (!%p166_p9), %v679_v1  ;;  %v205_v4 = vrot.slane (!%p166_p9), %v758_v3, 1  ;;  %v217_v5 = vrot.slane (!%p166_p9), %v758_v3, 2  ;;  %v229_v8 = vrot.slane (!%p166_p9), %v758_v3, 3  ;;  %v241_v23 = vrot.slane (!%p166_p9), %v758_v3, 4  ;;  %v682_v27 = vld [vmem:[%s975_s1 + $0x18] sm:$0xff] (!%p166_p9)   ;;  %s760_s20 = smov (!%p166_p9), 96  }
  0x10   : > { %341 = vmatprep.subr.bf16.mxu0 (!%p166_p9), %v757_v0  ;;  %s761_s22 = smov (!%p166_p9), 64   ;;  %v683_v32 = vld [vmem:[%s975_s1 + $0x20] sm:$0xff] (!%p166_p9)   ;;  %vm245_vm4 = vcmask (!%p166_p9), 261120   ;;  %v684_v33 = vld [vmem:[%s975_s1 + $0x28] sm:$0xff] (!%p166_p9)   ;;  %v685_v34 = vld [vmem:[%s975_s1 + $0x30] sm:$0xff] (!%p166_p9)   ;;  %vm248_vm5 = vcmask (!%p166_p9), 523264  }
  0x11   : > { %v686_v35 = vld [vmem:[%s975_s1 + $0x38] sm:$0xff] (!%p166_p9)   ;;  %v687_v36 = vld [vmem:[%s975_s1 + $0x40] sm:$0xff] (!%p166_p9)   ;;  %v688_v37 = vld [vmem:[%s975_s1 + $0x48] sm:$0xff] (!%p166_p9)   ;;  %vm251_vm6 = vcmask (!%p166_p9), 785408   ;;  %v762_v57 = vmov (!%p166_p9), 0.0|0.0   ;;  %vm763_vm7 = vmmov (!%p166_p9), 0  }
  0x12   : > { %v425_v54 = vld [vmem:[%s976_s2] sm:$0xff] (!%p166_p9)  ;;  %v426_v55 = vld [vmem:[%s976_s2 + $0x8] sm:$0xff] (!%p166_p9)  ;;  %615 = vmatprep.subr.bf16.mxu1 (!%p166_p9), %v762_v57  ;;  %612 = vmatprep.mubr.msk.f32.mxu1 (!%p166_p9), %vm763_vm7, %v758_v3  ;;  %v427_v58 = vld [vmem:[%s976_s2 + $0x10] sm:$0xff] (!%p166_p9)  ;;  %v381_v60 = vshrl.u32 (!%p166_p9), %v380_v59, 7  ;;  %v384_v61 = vand.u32 (!%p166_p9), 127, %v380_v59  ;;  %s188_s29 = sand.u32 (!%p166_p9), 1, %s747_s16  }
  0x13   : > { %342 = vmatpush1.bf16.msra.mxu0 (!%p166_p9), %v680_v2  ;;  %v616_v56 = vpack.c.bf16 (!%p166_p9), %v426_v55, %v425_v54  ;;  %s189_s5 = scalar_lea.vmem (!%p166_p9), [#allocation2], %s188_s29  ;;  %s512_s10 = scalar_lea.sflag (!%p166_p9), [#allocation3], %s188_s29 }
  0x14   : > { %343 = vmatprep.subr.bf16.mxu0 (!%p166_p9), %v757_v0  ;;  %v382_v62 = vadd.s32 (!%p166_p9), 8, %v381_v60  ;;  %vm392_vm8 = vcmp.ge.s32.totalorder (!%p166_p9), %v384_v61, 8  ;;  %vm393_vm9 = vcmp.lt.s32.totalorder (!%p166_p9), %v384_v61, 16  ;;  %vm386_vm10 = vcmp.lt.s32.totalorder (!%p166_p9), %v384_v61, 8  ;;  %s524_s6 = sshll.u32 (!%p166_p9), %s189_s5, 4  ;;  %s934_s6 = int_to_ptr.vmem [resolvable:$true] %s524_s6 }
  0x15   : > { %s191_s27 = scalar_select %p190_p10, %s811_s19, 1  ;;  %617 = vmatpush3.bf16.msra.mxu1 %v616_v56  ;;  %vm394_vm12 = vmand %vm392_vm8, %vm393_vm9  ;;  %vm401_vm14 = vcmp.ge.s32.totalorder %v384_v61, 16  ;;  %vm402_vm15 = vcmp.lt.s32.totalorder %v384_v61, 24  ;;  %vm412_vm9 = vcmask 195584  }
  0x16   : > { %610 = vmatprep.subr.mxu1 %v758_v3  ;;  %vm389_vm11 = vcmp.lt.s32.totalorder %v382_v62, 14  ;;  %vm396_vm13 = vcmp.lt.s32.totalorder %v382_v62, 13  ;;  %s693_s11 = scalar_lea.vmem %s934_s6, 16 }
  0x17   : > { %s601_s30 = sshll.u32 %s191_s27, 4  ;;  %344 = vmatpush1.bf16.msra.mxu0 %v681_v15  ;;  %p694_p11 = scmp.ne.s32.totalorder %s934_s6, %s693_s11 }
  0x18   : > { %s194_s9 = scalar_lea.vmem %s974_s0, %s601_s30  ;;  %345 = vmatprep.subr.bf16.mxu0 %v757_v0  ;;  %s598_s30 = sshll.u32 %s811_s19, 4 }
  0x19   : > { %v853_v6 = vld [vmem:[%s194_s9] sm:$0xff]  ;;  %v855_v7 = vld [vmem:[%s194_s9 + $0x8] sm:$0xff]  ;;  %611 = vmatpush3.msra.mxu1 %v427_v58  ;;  %s932_s9 = scalar_lea.hbm %s978_s4, %s598_s30  ;;  %p695_p12 = pnand %p694_p11, %p828_p5 }
  0x1a   : > { %v202_v9 = vrot.slane %v853_v6, 1  ;;  %v203_v10 = vrot.slane %v855_v7, 1  ;;  %v214_v11 = vrot.slane %v853_v6, 2  ;;  %v215_v12 = vrot.slane %v855_v7, 2  ;;  %s764_s19 = smov [#allocation2]  }
  0x1b   : > { %v226_v13 = vrot.slane %v853_v6, 3  ;;  %v227_v14 = vrot.slane %v855_v7, 3  ;;  %v238_v25 = vrot.slane %v853_v6, 4  ;;  %v239_v28 = vrot.slane %v855_v7, 4  ;;  %346 = vmatpush1.bf16.msra.mxu0 %v682_v27  ;;  %p696_p13 = pneg %p695_p12 }
  0x1c   : > { %v204_v16 = vsel %vm201_vm0, %v202_v9, %v203_v10  ;;  %v206_v17 = vsel %vm201_vm0, %v203_v10, %v205_v4  ;;  %v216_v18 = vsel %vm213_vm1, %v214_v11, %v215_v12  ;;  %v218_v19 = vsel %vm213_vm1, %v215_v12, %v217_v5  ;;  %347 = vmatprep.subr.bf16.mxu0 %v757_v0  ;;  %vm391_vm0 = vmand %vm386_vm10, %vm389_vm11 }
  0x1d   : > { %v664_v20 = vpack.i.bf16 %v206_v17, %v204_v16  ;;  %v228_v21 = vsel %vm225_vm2, %v226_v13, %v227_v14  ;;  %v230_v22 = vsel %vm225_vm2, %v227_v14, %v229_v8  ;;  %v669_v26 = vpack.i.bf16 %v218_v19, %v216_v18  ;;  %vm398_vm1 = vmand %vm394_vm12, %vm396_vm13  ;;  %v422_v13 = vld [vmem:[%s977_s3] sm:$0x3] }
  0x1e   : > { %v674_v24 = vpack.i.bf16 %v230_v22, %v228_v21  ;;  %v240_v29 = vsel %vm237_vm3, %v238_v25, %v239_v28  ;;  %v242_v30 = vsel %vm237_vm3, %v239_v28, %v241_v23  ;;  %vm403_vm2 = vmand %vm401_vm14, %vm402_vm15  ;;  %vm405_vm3 = vcmp.lt.s32.totalorder %v382_v62, 12 }
  0x1f   : > { %665 = vrot.lane.b32.xlu0 %v664_v20, %s759_s12  ;;  %v255_v31 = vpack.c.bf16 %v242_v30, %v240_v29  ;;  %348 = vmatpush1.bf16.msra.mxu0 %v683_v32  ;;  %v429_v17 = vrot.slane %v422_v13, 1  ;;  %s697_s12 = sshll.u32 %s764_s19, 4  ;;  %s698_s12 = int_to_ptr.vmem [resolvable:$false] %s697_s12 }
  0x20   : > { %675 = vrot.lane.b32.xlu1 %v674_v24, %s760_s20  ;;  %349 = vmatprep.subr.bf16.mxu0 %v757_v0  ;;  %s699_s13 = scalar_lea.vmem %s698_s12, 32  ;;  %p700_p0 = scmp.lt.s32.totalorder %s934_s6, %s698_s12 }
  0x21   : > { %595 = vmatprep.mubr.msk.bf16.mxu0 %vm245_vm4, %v255_v31  ;;  %p701_p1 = scmp.lt.s32.totalorder %s699_s13, %s693_s11 }
  0x23   : > { %670 = vrot.lane.b32.xlu0 %v669_v26, %s761_s22  ;;  %350 = vmatpush1.bf16.msra.mxu0 %v684_v33  ;;  %p702_p2 = por %p701_p1, %p700_p0 }
  0x24   : > { %351 = vmatprep.subr.bf16.mxu0 %v757_v0 }
  0x25   : > { %p703_p3 = pnand %p702_p2, %p696_p13 }
  0x27   : > { %352 = vmatpush1.bf16.msra.mxu0 %v685_v34 }
  0x28   : > { %353 = vmatprep.subr.bf16.mxu0 %v757_v0 }
  0x2b   : > { %354 = vmatpush1.bf16.msra.mxu0 %v686_v35 }
  0x2c   : > { %355 = vmatprep.subr.bf16.mxu0 %v757_v0 }
  0x2f   : > { %356 = vmatpush1.bf16.msra.mxu0 %v687_v36 }
  0x30   : > { %357 = vmatprep.subr.bf16.mxu0 %v757_v0 }
  0x33   : > { %358 = vmatpush1.bf16.msra.mxu0 %v688_v37 }
  0x91   : > { %v666_v38 = vpop.permute.xlu0 %665 }
  0x92   : > { %v676_v39 = vpop.permute.xlu1 %675  ;;  %v668_v40 = vunpack.i.h.bf16 %v666_v38  ;;  %v667_v41 = vunpack.i.l.bf16 %v666_v38 }
  0x93   : > { %v678_v43 = vunpack.i.h.bf16 %v676_v39  ;;  %v677_v44 = vunpack.i.l.bf16 %v676_v39 }
  0x94   : > { %v246_v47 = vsel %vm245_vm4, %v853_v6, %v667_v41  ;;  %v247_v48 = vsel %vm245_vm4, %v855_v7, %v668_v40  ;;  %vm399_vm4 = vmor %vm386_vm10, %vm394_vm12 }
  0x95   : > { %v671_v42 = vpop.permute.xlu0 %670  ;;  %vm408_vm7 = vmor %vm399_vm4, %vm403_vm2 }
  0x96   : > { %v673_v45 = vunpack.i.h.bf16 %v671_v42  ;;  %v672_v46 = vunpack.i.l.bf16 %v671_v42 }
  0x98   : > { %v249_v49 = vsel %vm248_vm5, %v246_v47, %v672_v46  ;;  %v250_v50 = vsel %vm248_vm5, %v247_v48, %v673_v45  ;;  %vm400_vm5 = vmor %vm391_vm0, %vm398_vm1 }
  0x99   : > { %v252_v51 = vsel %vm251_vm6, %v249_v49, %v677_v44  ;;  %v253_v52 = vsel %vm251_vm6, %v250_v50, %v678_v43  ;;  %vm407_vm6 = vmand %vm403_vm2, %vm405_vm3 }
  0x9a   : > { %v254_v53 = vpack.c.bf16 %v253_v52, %v252_v51  ;;  %vm409_vm8 = vmor %vm400_vm5, %vm407_vm6 }
  0x9c   : > { %372 = vmatmul.mubr.bf16.vlgmr.msra.gmra.mrb[0].mxu0 %v254_v53 }
 0x16f   : > { %v373_v63 = vpop.f32.mrb[0].mxu0 }
 0x170   : > { %v410_v0 = vsel %vm408_vm7, %v373_v63, -1e+30  ;;  %v375_v1 = vpop.f32.mrb[1].mxu0 }
 0x171   : > { %v376_v2 = vpop.f32.mrb[2].mxu0  ;;  %v413_v5 = vsel %vm412_vm9, %v410_v0, -inf }
 0x172   : > { %v411_v3 = vsel %vm409_vm8, %v376_v2, -1e+30  ;;  %v378_v4 = vpop.f32.mrb[3].mxu0 }
 0x173   : > { %v414_v6 = vsel %vm412_vm9, %v411_v3, -inf }
 0x174   : > { %v415_v7 = vmax.f32 %v413_v5, %v414_v6 }
 0x176   : > { %v416_v8 = vrot.slane %v415_v7, 4 }
 0x178   : > { %v417_v9 = vmax.f32 %v415_v7, %v416_v8 }
 0x17a   : > { %v418_v10 = vrot.slane %v417_v9, 2 }
 0x17c   : > { %v419_v11 = vmax.f32 %v417_v9, %v418_v10 }
 0x17e   : > { %v420_v12 = vrot.slane %v419_v11, 1 }
 0x180   : > { %v421_v14 = vmax.f32 %v419_v11, %v420_v12 }
 0x182   : > { %v423_v15 = vadd.f32 %v422_v13, %v421_v14 }
 0x184   : > { %v424_v16 = vmax.f32 %v423_v15, 0.0 }
 0x186   : > { %613 = vmatmul.mubr.msk.f32.vlgmr.msra.gmra.mrb[0].mxu1 %vm412_vm9, %v424_v16 }
 0x259   : > { %v500_v18 = vpop.f32.mrb[0].mxu1 }
 0x25a   : > { %v501_v19 = vadd.f32 %v500_v18, %v429_v17  ;;  %v614_v20 = vpop.f32.mrb[1].mxu1 }
 0x25c   : > { %v597_v21 = vmul.f32 -1.442695, %v501_v19 }
 0x25e   : > { %689 = vpow2.f32 %v597_v21 }
 0x268   : > { %v690_v22 = vpop.eup %689 }
 0x269   : > { %v507_v23 = vadd.f32 1.0, %v690_v22 }
 0x26b   : > { %691 = vrcp.f32 %v507_v23 }
 0x275   : > { %v692_v24 = vpop.eup %691 }
 0x276   : > { %510 = vst [vmem:[%s189_s5] sm:$0x1] %v692_v24 }
 0x277   : > { %706 = shalt.err (!%p703_p3)
}
 0x278   : > { %s707_s14 = scalar_lea.hbm %s932_s9, 16  ;;  %s711_s23 = scalar_lea.hbm %s978_s4, 32 }
 0x279   : > { %p708_p4 = scmp.ne.s32.totalorder %s932_s9, %s707_s14  ;;  %p712_p9 = scmp.lt.u32.totalorder %s932_s9, %s978_s4 }
 0x27a   : > { %p713_p10 = scmp.lt.u32.totalorder %s711_s23, %s707_s14  ;;  %p715_p12 = scmp.lt.u32.totalorder %s707_s14, %s932_s9 }
 0x27b   : > { %p709_p7 = pnand %p708_p4, %p828_p5 }
 0x27c   : > { %p714_p11 = por %p713_p10, %p712_p9 }
 0x27d   : > { %p710_p8 = pneg %p709_p7 }
 0x27e   : > { %p716_p13 = por %p715_p12, %p714_p11 }
 0x280   : > { %p717_p0 = pnand %p716_p13, %p710_p8 }
 0x282   : > { %720 = shalt.err (!%p717_p0)
}
 0x283   : > { %618 = dma.vmem_to_hbm [thread:$0]  (%p828_p5), %s934_s6, 16, %s932_s9, %s512_s10  }
 0x284 PF: > { %p624_p1 = scmp.ge.s32.totalorder %s755_s18, 2  ;;  %s536_s29 = sand.u32 1, %s743_s15  }
 0x285   : > { %s537_s30 = scalar_lea.sflag [#allocation3], %s536_s29 }
 0x286   : > { %p621_p2 = pnand %p624_p1, %p832_p6 }
 0x288   : > { %738 = dma.done.wait (!%p621_p2), %s537_s30, 16  }
 0x289   : > { %740 = vsyncadd (!%p621_p2), %s537_s30, 4294967280  ;;  %p14_p3 = scmp.ge.s32.totalorder %s815_s21, 4   ;;  %s981_s15 = smov %s747_s16 }
 0x28a   : > { %s982_s16 = smov %s751_s17  ;;  %s983_s17 = smov %s826_s24 }
 0x28b   : > { %s984_s18 = smov %s815_s21  ;;  %16 = sbr.rel (!%p14_p3) target bundleno = 3 (0x3), region = 71 }
 0x292   :  { %541 = vsyncpa [#allocation3], 1 }
 0x293   :  { %543 = vsyncpa [#allocation3 + $0x1], 1 }

</bundles_post_ra>
